<compile_context>
chip_gen: v7x
topology: tpu7x:2x2x1
jax: 0.10.0
libtpu: 0.0.40
codegen_flags: <defaults>
</compile_context>

<pallas_src>
import functools

import jax
import jax.numpy as jnp
from jax.experimental import pallas as pl
from jax.experimental.pallas import tpu as pltpu


# ----------------------------- fused Pallas kernel -------------------------- #

def cnn_fused_kernel(lhs_ref, w_ref, bconv_ref, mask_ref, wlin_ref, blin_ref,
                     out_ref, *, bb, t_pad):
    """Fused conv(x3) + LeakyReLU + max-pool-over-time + Linear(NC->1).

    lhs_ref:   (bb*t_pad, kh_max*E) bf16  pre-built im2col rows for this block
    w_ref:     (kh_max*E, NC)       bf16  conv weights, zero-padded & concat'd
    bconv_ref: (1, NC)              f32   conv biases (concatenated)
    mask_ref:  (t_pad, NC)          f32   additive validity mask (0 / -3e38)
    wlin_ref:  (1, NC)              f32   final linear weight (row form)
    blin_ref:  (1,)                 f32   final linear bias (SMEM scalar)
    out_ref:   (bb, 1)              f32   output logits for this batch block
    """
    # Single MXU matmul for the whole batch block, f32 accumulation.
    acc = jnp.dot(lhs_ref[...], w_ref[...],
                  preferred_element_type=jnp.float32)        # (bb*t_pad, NC)
    nc = acc.shape[-1]

    acc = acc + bconv_ref[...]                               # conv bias
    act = jnp.maximum(acc, 0.01 * acc)                       # LeakyReLU(0.01)

    # Per-batch max-pool over time, invalid rows knocked out additively.
    act3 = act.reshape(bb, t_pad, nc) + mask_ref[...]        # (bb, t_pad, NC)
    pooled = jnp.max(act3, axis=1)                           # (bb, NC)

    # Final Linear(NC -> 1): VPU multiply + lane reduction (no N=1 MXU matmul).
    logits = (jnp.sum(pooled * wlin_ref[...], axis=-1, keepdims=True)
              + blin_ref[0])                                 # (bb, 1)
    out_ref[...] = logits


# ------------------------------- host wrapper ------------------------------- #

def cnnlayer_forward(x, params, *, kernel_heights=(3, 5, 6), out_channels=128):
    """Reproduces CNNlayer.forward: x (B, S, E) f32 -> (B,) f32 (eval mode)."""
    B, S, E = x.shape
    khs = tuple(kernel_heights)
    kh_max, kh_min = max(khs), min(khs)
    C = out_channels
    NC = len(khs) * C
    K = kh_max * E

    T = S - kh_min + 1                       # longest valid conv output length
    T_PAD = ((T + 15) // 16) * 16            # bf16 sublane-friendly row count
    BB = B if B <= 8 else 8                  # batch elements per grid step
    B_pad = ((B + BB - 1) // BB) * BB
    G = B_pad // BB

    # ---- host-side bf16 im2col (XLA fuses the gather; only ~tens of KiB) ----
    x16 = x.astype(jnp.bfloat16)
    s_need = T_PAD + kh_max - 1
    xp = jnp.pad(x16, ((0, B_pad - B), (0, s_need - S), (0, 0)))
    lhs = jnp.concatenate([xp[:, dh:dh + T_PAD, :] for dh in range(kh_max)],
                          axis=-1)                           # (B_pad, T_PAD, K)
    lhs = lhs.reshape(B_pad * T_PAD, K)                      # (B_pad*T_PAD, K)

    # Additive validity mask: row t valid for branch i iff t < S - kh_i + 1.
    l_out = jnp.repeat(jnp.asarray([S - kh + 1 for kh in khs], jnp.int32), C)
    mask = jnp.where(
        jnp.arange(T_PAD, dtype=jnp.int32)[:, None] < l_out[None, :],
        0.0, -3.0e38).astype(jnp.float32)                    # (T_PAD, NC)

    kern = functools.partial(cnn_fused_kernel, bb=BB, t_pad=T_PAD)

    flops = 2 * (B_pad * T_PAD) * K * NC + 5 * B_pad * T_PAD * NC
    bytes_accessed = (lhs.size * 2 + params["w_all"].size * 2
                      + (2 * NC + T_PAD * NC + 1 + B_pad) * 4)

    out = pl.pallas_call(
        kern,
        out_shape=jax.ShapeDtypeStruct((B_pad, 1), jnp.float32),
        grid=(G,),
        in_specs=[
            pl.BlockSpec((BB * T_PAD, K), lambda i: (i, 0)),   # im2col rows
            pl.BlockSpec((K, NC), lambda i: (0, 0)),           # conv weights
            pl.BlockSpec((1, NC), lambda i: (0, 0)),           # conv bias
            pl.BlockSpec((T_PAD, NC), lambda i: (0, 0)),       # validity mask
            pl.BlockSpec((1, NC), lambda i: (0, 0)),           # linear weight
            pl.BlockSpec(memory_space=pltpu.MemorySpace.SMEM),  # linear bias
        ],
        out_specs=pl.BlockSpec((BB, 1), lambda i: (i, 0)),
        compiler_params=pltpu.CompilerParams(
            dimension_semantics=("parallel",)),
        cost_estimate=pl.CostEstimate(flops=flops, transcendentals=0,
                                      bytes_accessed=bytes_accessed),
    )(lhs, params["w_all"], params["b_all"], mask,
      params["w_lin"], params["b_lin"])

    return out[:B, 0]                        # .view(-1), drop batch padding


# ---------------------------- deterministic params -------------------------- #

def init_params(key, out_channels=128, n_class=1, embedding_dim=32,
                kernel_heights=(3, 5, 6)):
    """Builds fused params.  Conv weights use the native (kh, E, C) layout
    (torch (C,1,kh,E) weights would need a host-side transpose)."""
    assert n_class == 1, "fused epilogue implemented for n_class == 1"
    khs = tuple(kernel_heights)
    C, E = out_channels, embedding_dim
    kh_max = max(khs)
    keys = jax.random.split(key, 2 * len(khs) + 2)
    ki = 0
    w_blocks, b_blocks = [], []
    for kh in khs:
        fan_in = 1 * kh * E
        fan_out = C * kh * E
        bound = (6.0 / (fan_in + fan_out)) ** 0.5          # xavier_uniform
        w = jax.random.uniform(keys[ki], (kh, E, C), jnp.float32, -bound, bound)
        ki += 1
        bb = 1.0 / (fan_in ** 0.5)                         # torch conv bias init
        b = jax.random.uniform(keys[ki], (1, C), jnp.float32, -bb, bb)
        ki += 1
        w_pad = jnp.zeros((kh_max, E, C), jnp.float32).at[:kh].set(w)
        w_blocks.append(w_pad.reshape(kh_max * E, C))
        b_blocks.append(b)

    w_all = jnp.concatenate(w_blocks, axis=1).astype(jnp.bfloat16)  # (kh_max*E, NC)
    b_all = jnp.concatenate(b_blocks, axis=1)                       # (1, NC)

    feat = len(khs) * C
    bound = (6.0 / (feat + n_class)) ** 0.5                 # xavier for Linear
    w_lin = jax.random.uniform(keys[ki], (n_class, feat), jnp.float32,
                               -bound, bound)               # row form (1, NC)
    ki += 1
    bb = 1.0 / (feat ** 0.5)
    b_lin = jax.random.uniform(keys[ki], (n_class,), jnp.float32, -bb, bb)
    return {"w_all": w_all, "b_all": b_all, "w_lin": w_lin, "b_lin": b_lin}


# ------------------------------ pure-JAX reference --------------------------- #

def reference_forward(x, params, *, kernel_heights=(3, 5, 6), out_channels=128):
    khs = tuple(kernel_heights)
    C = out_channels
    B, S, E = x.shape
    kh_max = max(khs)
    NC = len(khs) * C
    xq = x.astype(jnp.bfloat16).astype(jnp.float32)         # match kernel quant
    w_all = params["w_all"].astype(jnp.float32).reshape(kh_max, E, NC)
    pooled = []
    for i, kh in enumerate(khs):
        w = w_all[:, :, i * C:(i + 1) * C]
        b = params["b_all"][:, i * C:(i + 1) * C]
        l_out = S - kh + 1
        acc = jnp.zeros((B, l_out, C), jnp.float32)
        for dh in range(kh):
            acc = acc + jnp.einsum('bse,ec->bsc', xq[:, dh:dh + l_out, :],
                                   w[dh], precision=jax.lax.Precision.HIGHEST)
        acc = acc + b[None]
        act = jnp.where(acc >= 0, acc, 0.01 * acc)
        pooled.append(jnp.max(act, axis=1))
    allo = jnp.concatenate(pooled, axis=1)                   # (B, NC)
    out = allo @ params["w_lin"].astype(jnp.float32).T + params["b_lin"]
    return out.reshape(-1)


if __name__ == "__main__":
    key = jax.random.PRNGKey(0)
    k_param, k_x = jax.random.split(key)

    B, S, E = 2, 16, 32                 # batch, sequence length, embedding dim
    KHS, C = (3, 5, 6), 128
    params = init_params(k_param, out_channels=C, n_class=1,
                         embedding_dim=E, kernel_heights=KHS)
    x = jax.random.normal(k_x, (B, S, E), jnp.float32)

    out = cnnlayer_forward(x, params, kernel_heights=KHS, out_channels=C)
    out = jax.block_until_ready(out)
    assert out.shape == (B,), out.shape

    ref = jax.block_until_ready(
        reference_forward(x, params, kernel_heights=KHS, out_channels=C))
    assert jnp.allclose(out, ref, rtol=1e-2, atol=1e-2), (out, ref)

    print("KERNEL_OK")
</pallas_src>

<mosaic_0001>
module attributes {stable_mosaic.version = 11 : i64} {
  func.func @cnn_fused_kernel(%arg0: i32, %arg1: memref<32x192xbf16, #tpu.memory_space<vmem>>, %arg2: memref<192x384xbf16, #tpu.memory_space<vmem>>, %arg3: memref<1x384xf32, #tpu.memory_space<vmem>>, %arg4: memref<16x384xf32, #tpu.memory_space<vmem>>, %arg5: memref<1x384xf32, #tpu.memory_space<vmem>>, %arg6: memref<1xf32, #tpu.memory_space<smem>>, %arg7: memref<2x1xf32, #tpu.memory_space<vmem>>) attributes {dimension_semantics = [#tpu.dimension_semantics<parallel>], iteration_bounds = array<i64: 1>, scalar_prefetch = 0 : i64, scratch_operands = 0 : i64, tpu.core_type = #tpu.core_type<tc>, window_params = [{transform_indices = @transform_0, window_bounds = array<i64: 32, 192>}, {pipeline_mode = #tpu.pipeline_mode<synchronous>, transform_indices = @transform_1, window_bounds = array<i64: 192, 384>}, {pipeline_mode = #tpu.pipeline_mode<synchronous>, transform_indices = @transform_2, window_bounds = array<i64: 1, 384>}, {pipeline_mode = #tpu.pipeline_mode<synchronous>, transform_indices = @transform_3, window_bounds = array<i64: 16, 384>}, {pipeline_mode = #tpu.pipeline_mode<synchronous>, transform_indices = @transform_4, window_bounds = array<i64: 1, 384>}, {transform_indices = @transform_5, window_bounds = array<i64: 1>}, {transform_indices = @transform_6, window_bounds = array<i64: 2, 1>}]} {
    %c0 = arith.constant 0 : index
    %c0_0 = arith.constant 0 : index
    %0 = vector.load %arg1[%c0, %c0_0] : memref<32x192xbf16, #tpu.memory_space<vmem>>, vector<32x192xbf16>
    %c0_1 = arith.constant 0 : index
    %c0_2 = arith.constant 0 : index
    %1 = vector.load %arg2[%c0_1, %c0_2] : memref<192x384xbf16, #tpu.memory_space<vmem>>, vector<192x384xbf16>
    %cst = arith.constant dense<0.000000e+00> : vector<32x384xf32>
    %2 = tpu.matmul %0, %1, %cst {dimension_numbers = #tpu.dot_dimension_numbers<[1], [0], [0], [1], [0, 0, 1, 1], [], []>} : vector<32x192xbf16>, vector<192x384xbf16>, vector<32x384xf32> -> vector<32x384xf32>
    %c0_3 = arith.constant 0 : index
    %c0_4 = arith.constant 0 : index
    %3 = vector.load %arg3[%c0_3, %c0_4] : memref<1x384xf32, #tpu.memory_space<vmem>>, vector<1x384xf32>
    %4 = vector.broadcast %3 : vector<1x384xf32> to vector<32x384xf32>
    %5 = arith.addf %2, %4 : vector<32x384xf32>
    %cst_5 = arith.constant 0.00999999977 : f32
    %6 = vector.broadcast %cst_5 : f32 to vector<32x384xf32>
    %7 = arith.mulf %6, %5 : vector<32x384xf32>
    %8 = arith.maximumf %5, %7 : vector<32x384xf32>
    %9 = vector.shape_cast %8 : vector<32x384xf32> to vector<2x16x384xf32>
    %c0_6 = arith.constant 0 : index
    %c0_7 = arith.constant 0 : index
    %10 = vector.load %arg4[%c0_6, %c0_7] : memref<16x384xf32, #tpu.memory_space<vmem>>, vector<16x384xf32>
    %11 = vector.shape_cast %10 : vector<16x384xf32> to vector<1x16x384xf32>
    %12 = vector.broadcast %11 : vector<1x16x384xf32> to vector<2x16x384xf32>
    %13 = arith.addf %9, %12 : vector<2x16x384xf32>
    %cst_8 = arith.constant dense<0xFF800000> : vector<2x384xf32>
    %14 = vector.multi_reduction <maximumf>, %13, %cst_8 [1] : vector<2x16x384xf32> to vector<2x384xf32>
    %c0_9 = arith.constant 0 : index
    %c0_10 = arith.constant 0 : index
    %15 = vector.load %arg5[%c0_9, %c0_10] : memref<1x384xf32, #tpu.memory_space<vmem>>, vector<1x384xf32>
    %16 = vector.broadcast %15 : vector<1x384xf32> to vector<2x384xf32>
    %17 = arith.mulf %14, %16 : vector<2x384xf32>
    %cst_11 = arith.constant dense<0.000000e+00> : vector<2xf32>
    %18 = vector.multi_reduction <add>, %17, %cst_11 [1] : vector<2x384xf32> to vector<2xf32>
    %19 = vector.shape_cast %18 : vector<2xf32> to vector<2x1xf32>
    %c0_12 = arith.constant 0 : index
    %20 = memref.load %arg6[%c0_12] : memref<1xf32, #tpu.memory_space<smem>>
    %21 = vector.broadcast %20 : f32 to vector<2x1xf32>
    %22 = arith.addf %19, %21 : vector<2x1xf32>
    %c0_13 = arith.constant 0 : index
    %c0_14 = arith.constant 0 : index
    %23 = vector.load %arg7[%c0_13, %c0_14] : memref<2x1xf32, #tpu.memory_space<vmem>>, vector<2x1xf32>
    tpu.vector_store %arg7[%c0_13, %c0_14], %22 {strides = array<i32>} : memref<2x1xf32, #tpu.memory_space<vmem>>, vector<2x1xf32>,
    return
  }
  func.func @transform_0(%arg0: i32) -> (i32, i32) {
    %c0_i32 = arith.constant 0 : i32
    %c0_i32_0 = arith.constant 0 : i32
    return %arg0, %c0_i32 : i32, i32
  }
  func.func @transform_1(%arg0: i32) -> (i32, i32) {
    %c0_i32 = arith.constant 0 : i32
    %c0_i32_0 = arith.constant 0 : i32
    %c0_i32_1 = arith.constant 0 : i32
    return %c0_i32, %c0_i32_0 : i32, i32
  }
  func.func @transform_2(%arg0: i32) -> (i32, i32) {
    %c0_i32 = arith.constant 0 : i32
    %c0_i32_0 = arith.constant 0 : i32
    %c0_i32_1 = arith.constant 0 : i32
    return %c0_i32, %c0_i32_0 : i32, i32
  }
  func.func @transform_3(%arg0: i32) -> (i32, i32) {
    %c0_i32 = arith.constant 0 : i32
    %c0_i32_0 = arith.constant 0 : i32
    %c0_i32_1 = arith.constant 0 : i32
    return %c0_i32, %c0_i32_0 : i32, i32
  }
  func.func @transform_4(%arg0: i32) -> (i32, i32) {
    %c0_i32 = arith.constant 0 : i32
    %c0_i32_0 = arith.constant 0 : i32
    %c0_i32_1 = arith.constant 0 : i32
    return %c0_i32, %c0_i32_0 : i32, i32
  }
  func.func @transform_5(%arg0: i32) -> i32 {
    %c0_i32 = arith.constant 0 : i32
    %c0_i32_0 = arith.constant 0 : i32
    return %c0_i32 : i32
  }
  func.func @transform_6(%arg0: i32) -> (i32, i32) {
    %c0_i32 = arith.constant 0 : i32
    %c0_i32_0 = arith.constant 0 : i32
    return %arg0, %c0_i32 : i32, i32
  }
}

</mosaic_0001>

<bundles_post_ra>
// kernel: tpu_custom_call.1
= control target key start
LH: loop header
LB: loop body
LE: loop exit
PB: predicated region body
PF: predicated region fallthrough
CT: control target
= control target key end

     0   :  { %12 = vsyncpa [#allocation4], 0  ;;  %s906_s0 = inlined_call_operand.hbm [shape: bf16[32,192], index: 0, kind: input, shape index: {}]   ;;  %s907_s1 = inlined_call_operand.hbm [shape: bf16[192,384], index: 1, kind: input, shape index: {}]   ;;  %s908_s2 = inlined_call_operand.vmem [shape: f32[1,384], index: 2, kind: input, shape index: {}]   ;;  %s909_s3 = inlined_call_operand.hbm [shape: f32[16,384], index: 3, kind: input, shape index: {}]   ;;  %s910_s4 = inlined_call_operand.vmem [shape: f32[1,384], index: 4, kind: input, shape index: {}]   ;;  %s911_s5 = inlined_call_operand.<no memory space> [shape: f32[1], index: 5, kind: input, shape index: {}]   ;;  %s912_s6 = inlined_call_operand.vmem [shape: f32[2,1], index: 6, kind: output, shape index: {}]  }
   0x1   :  { %13 = vsyncpa [#allocation6], 0  ;;  %s774_s21 = smov [#allocation5]   ;;  %s704_s25 = scalar_lea.hbm %s907_s1, 4608 }
   0x2   :  { %s31_s22 = sshll.u32 %s774_s21, 4  ;;  %p705_p0 = scmp.ne.s32.totalorder %s907_s1, %s704_s25  ;;  %s32_s22 = int_to_ptr.vmem [resolvable:$true] %s31_s22 }
   0x3   :  { %p708_p1 = scmp.lt.u32.totalorder %s704_s25, %s907_s1 }
   0x5   :  { %p710_p2 = pnand %p708_p1, %p705_p0 }
   0x7   :  { %713 = shalt.err (!%p710_p2)
}
   0x8   :  { %s714_s30 = scalar_lea.vmem %s32_s22, 4608  ;;  %p719_p4 = scmp.lt.s32.totalorder %s32_s22, %s32_s22 }
   0x9   :  { %p715_p3 = scmp.ne.s32.totalorder %s32_s22, %s714_s30  ;;  %p720_p5 = scmp.lt.s32.totalorder %s714_s30, %s714_s30 }
   0xb   :  { %p721_p6 = por %p720_p5, %p719_p4 }
   0xd   :  { %p722_p7 = pnand %p721_p6, %p715_p3 }
   0xf   :  { %725 = shalt.err (!%p722_p7)
}
  0x10   :  { %s775_s7 = smov 192   ;;  %s776_s8 = smov 12  }
  0x11   :  { %37 = dma.hbm_to_vmem [thread:$0]  %s907_s1, 4608, %s32_s22, [#allocation6], %s775_s7, %s775_s7, %s776_s8  }
  0x12   :  { %s777_s11 = smov [#allocation3]   ;;  %s726_s15 = scalar_lea.hbm %s906_s0, 512 }
  0x13   :  { %s19_s12 = sshll.u32 %s777_s11, 4  ;;  %p727_p8 = scmp.ne.s32.totalorder %s906_s0, %s726_s15  ;;  %s20_s12 = int_to_ptr.vmem [resolvable:$true] %s19_s12 }
  0x14   :  { %p730_p9 = scmp.lt.u32.totalorder %s726_s15, %s906_s0 }
  0x16   :  { %p732_p10 = pnand %p730_p9, %p727_p8 }
  0x18   :  { %735 = shalt.err (!%p732_p10)
}
  0x19   :  { %s736_s20 = scalar_lea.vmem %s20_s12, 512  ;;  %p741_p12 = scmp.lt.s32.totalorder %s20_s12, %s20_s12 }
  0x1a   :  { %p737_p11 = scmp.ne.s32.totalorder %s20_s12, %s736_s20  ;;  %p742_p13 = scmp.lt.s32.totalorder %s736_s20, %s736_s20 }
  0x1c   :  { %p743_p0 = por %p742_p13, %p741_p12 }
  0x1e   :  { %p744_p1 = pnand %p743_p0, %p737_p11 }
  0x20   :  { %747 = shalt.err (!%p744_p1)
}
  0x21   :  { %s778_s1 = smov 128   ;;  %s779_s21 = smov 8  }
  0x22   :  { %25 = dma.hbm_to_vmem [thread:$0]  %s906_s0, 512, %s20_s12, [#allocation4], %s778_s1, %s778_s1, %s779_s21  }
  0x23   :  { %s780_s24 = smov [#allocation7]   ;;  %s748_s28 = scalar_lea.hbm %s909_s3, 768 }
  0x24   :  { %s45_s25 = sshll.u32 %s780_s24, 4  ;;  %p749_p2 = scmp.ne.s32.totalorder %s909_s3, %s748_s28  ;;  %s46_s25 = int_to_ptr.vmem [resolvable:$true] %s45_s25 }
  0x25   :  { %p752_p3 = scmp.lt.u32.totalorder %s748_s28, %s909_s3 }
  0x27   :  { %p754_p4 = pnand %p752_p3, %p749_p2 }
  0x29   :  { %757 = shalt.err (!%p754_p4)
}
  0x2a   :  { %s758_s9 = scalar_lea.vmem %s46_s25, 768  ;;  %p763_p6 = scmp.lt.s32.totalorder %s46_s25, %s46_s25 }
  0x2b   :  { %p759_p5 = scmp.ne.s32.totalorder %s46_s25, %s758_s9  ;;  %p764_p7 = scmp.lt.s32.totalorder %s758_s9, %s758_s9 }
  0x2d   :  { %p765_p8 = por %p764_p7, %p763_p6 }
  0x2f   :  { %p766_p9 = pnand %p765_p8, %p759_p5 }
  0x31   :  { %769 = shalt.err (!%p766_p9)
}
  0x32   :  { %s781_s0 = smov 384   ;;  %s782_s10 = smov 24  }
  0x33   :  { %51 = dma.hbm_to_vmem [thread:$0]  %s909_s3, 768, %s46_s25, [#allocation6], %s781_s0, %s781_s0, %s782_s10  }
  0x34   :  { %770 = dma.done.wait [#allocation4], 512  }
  0x35   :  { %771 = vsyncadd [#allocation4], 4294966784 }
  0x36   :  { %772 = dma.done.wait [#allocation6], 5376  }
  0x37   :  { %773 = vsyncadd [#allocation6], 4294961920  ;;  %v783_v0 = vmov 0   ;;  %v650_v1 = vld [vmem:[#allocation5 + $0x4] ss:$12 sps:$4 sm:$0xff]   ;;  %vm345_vm0 = vcmask 523264   ;;  %v120_v41 = vlaneseq }
  0x38   :  { %405 = vmatprep.subr.bf16.mxu1 %v783_v0  ;;  %v652_v2 = vld [vmem:[#allocation5 + $0x8] ss:$12 sps:$4 sm:$0xff]   ;;  %352 = vmatprep.subr.bf16.mxu0 %v650_v1  ;;  %v653_v3 = vld [vmem:[#allocation5] ss:$12 sps:$4 sm:$0xff]   ;;  %v657_v6 = vld [vmem:[#allocation5 + $0x18] ss:$12 sps:$4 sm:$0xff]  }
  0x39   :  { %406 = vmatpush1.bf16.msra.mxu1 %v652_v2  ;;  %v654_v4 = vld [vmem:[#allocation5 + $0x1c] ss:$12 sps:$4 sm:$0xff]   ;;  %353 = vmatpush1.bf16.msra.mxu0 %v653_v3  ;;  %v656_v5 = vld [vmem:[#allocation5 + $0x20] ss:$12 sps:$4 sm:$0xff]   ;;  %v660_v8 = vld [vmem:[#allocation5 + $0x38] ss:$12 sps:$4 sm:$0xff]  }
  0x3a   :  { %407 = vmatprep.subr.bf16.mxu1 %v783_v0  ;;  %354 = vmatprep.subr.bf16.mxu0 %v654_v4  ;;  %v658_v7 = vld [vmem:[#allocation5 + $0x34] ss:$12 sps:$4 sm:$0xff]   ;;  %v661_v9 = vld [vmem:[#allocation5 + $0x30] ss:$12 sps:$4 sm:$0xff]   ;;  %v662_v10 = vld [vmem:[#allocation5 + $0x4c] ss:$12 sps:$4 sm:$0xff]  }
  0x3b   :  { %v664_v11 = vld [vmem:[#allocation5 + $0x50] ss:$12 sps:$4 sm:$0xff]   ;;  %v665_v12 = vld [vmem:[#allocation5 + $0x48] ss:$12 sps:$4 sm:$0xff]   ;;  %v669_v15 = vld [vmem:[#allocation5 + $0x60] ss:$12 sps:$4 sm:$0xff]  }
  0x3c   :  { %v666_v13 = vld [vmem:[#allocation5 + $0x64] ss:$12 sps:$4 sm:$0xff]   ;;  %v668_v14 = vld [vmem:[#allocation5 + $0x68] ss:$12 sps:$4 sm:$0xff]   ;;  %v672_v17 = vld [vmem:[#allocation5 + $0x80] ss:$12 sps:$4 sm:$0xff]  }
  0x3d   :  { %408 = vmatpush1.bf16.msra.mxu1 %v656_v5  ;;  %355 = vmatpush1.bf16.msra.mxu0 %v657_v6  ;;  %v670_v16 = vld [vmem:[#allocation5 + $0x7c] ss:$12 sps:$4 sm:$0xff]   ;;  %v673_v18 = vld [vmem:[#allocation5 + $0x78] ss:$12 sps:$4 sm:$0xff]   ;;  %v674_v19 = vld [vmem:[#allocation5 + $0x94] ss:$12 sps:$4 sm:$0xff]  }
  0x3e   :  { %409 = vmatprep.subr.bf16.mxu1 %v783_v0  ;;  %356 = vmatprep.subr.bf16.mxu0 %v658_v7  ;;  %v676_v20 = vld [vmem:[#allocation5 + $0x98] ss:$12 sps:$4 sm:$0xff]   ;;  %v677_v21 = vld [vmem:[#allocation5 + $0x90] ss:$12 sps:$4 sm:$0xff]   ;;  %v681_v24 = vld [vmem:[#allocation5 + $0xa8] ss:$12 sps:$4 sm:$0xff]  }
  0x3f   :  { %v678_v22 = vld [vmem:[#allocation5 + $0xac] ss:$12 sps:$4 sm:$0xff]   ;;  %v680_v23 = vld [vmem:[#allocation5 + $0xb0] ss:$12 sps:$4 sm:$0xff]   ;;  %v684_v27 = vld [vmem:[#allocation5 + $0xc8] ss:$12 sps:$4 sm:$0xff]  }
  0x40   :  { %v682_v25 = vld [vmem:[#allocation5 + $0xc4] ss:$12 sps:$4 sm:$0xff]   ;;  %v685_v28 = vld [vmem:[#allocation5 + $0xc0] ss:$12 sps:$4 sm:$0xff]   ;;  %v686_v29 = vld [vmem:[#allocation5 + $0xdc] ss:$12 sps:$4 sm:$0xff]  }
  0x41   :  { %410 = vmatpush1.bf16.msra.mxu1 %v660_v8  ;;  %357 = vmatpush1.bf16.msra.mxu0 %v661_v9  ;;  %v700_v26 = vld [vmem:[#allocation3 + $0x4] ss:$8 sps:$4 sm:$0xff]   ;;  %v690_v32 = vld [vmem:[#allocation5 + $0xf4] ss:$12 sps:$4 sm:$0xff]   ;;  %v693_v34 = vld [vmem:[#allocation5 + $0xf0] ss:$12 sps:$4 sm:$0xff]  }
  0x42   :  { %411 = vmatprep.subr.bf16.mxu1 %v783_v0  ;;  %358 = vmatprep.subr.bf16.mxu0 %v662_v10  ;;  %v688_v30 = vld [vmem:[#allocation5 + $0xe0] ss:$12 sps:$4 sm:$0xff]   ;;  %v689_v31 = vld [vmem:[#allocation5 + $0xd8] ss:$12 sps:$4 sm:$0xff]   ;;  %v696_v36 = vld [vmem:[#allocation5 + $0x110] ss:$12 sps:$4 sm:$0xff]  }
  0x43   :  { %638 = vmatprep.mubr.msk.bf16.mxu1 %vm345_vm0, %v700_v26  ;;  %636 = vmatprep.mubr.msk.bf16.mxu0 %vm345_vm0, %v700_v26  ;;  %v692_v33 = vld [vmem:[#allocation5 + $0xf8] ss:$12 sps:$4 sm:$0xff]   ;;  %v697_v37 = vld [vmem:[#allocation5 + $0x108] ss:$12 sps:$4 sm:$0xff]   ;;  %v871_v42 = vshrl.u32 %v120_v41, 7  ;;  %vm568_vm1 = vcmask 1041409  }
  0x44   :  { %v694_v35 = vld [vmem:[#allocation5 + $0x10c] ss:$12 sps:$4 sm:$0xff]   ;;  %v698_v38 = vld [vmem:[#allocation3] ss:$8 sps:$4 sm:$0xff]   ;;  %v701_v39 = vld [vmem:[#allocation3 + $0x14] ss:$8 sps:$4 sm:$0xff]  }
  0x45   :  { %412 = vmatpush1.bf16.msra.mxu1 %v664_v11  ;;  %359 = vmatpush1.bf16.msra.mxu0 %v665_v12  ;;  %v703_v40 = vld [vmem:[#allocation3 + $0x10] ss:$8 sps:$4 sm:$0xff]   ;;  %v130_v43 = vsub.s32 2, %v871_v42  ;;  %v118_v44 = vld [vmem:[%s908_s2] sm:$0x7]  ;;  %v122_v45 = vsub.s32 0, %v871_v42 }
  0x46   :  { %413 = vmatprep.subr.bf16.mxu1 %v783_v0  ;;  %360 = vmatprep.subr.bf16.mxu0 %v666_v13  ;;  %v126_v46 = vsub.s32 1, %v871_v42  ;;  %v480_v62 = vld [vmem:[#allocation7 + $0x10] sm:$0xff]  ;;  %v483_v7 = vld [vmem:[#allocation7 + $0x28] sm:$0xff]  ;;  %v478_v10 = vld [vmem:[#allocation7] sm:$0xff]  ;;  %vm577_vm2 = vcmask 1041408   ;;  %vm588_vm3 = vcmask 1024  }
  0x47   :  { %v131_v47 = vrot.slane %v118_v44, %v130_v43  ;;  %v123_v48 = vrot.slane %v118_v44, %v122_v45  ;;  %v479_v12 = vld [vmem:[#allocation7 + $0x8] sm:$0xff] }
  0x48   :  { %v885_v49 = vrot.slane %v118_v44, %v126_v46 }
  0x49   :  { %414 = vmatpush1.bf16.msra.mxu1 %v668_v14  ;;  %361 = vmatpush1.bf16.msra.mxu0 %v669_v15  ;;  %v481_v14 = vld [vmem:[#allocation7 + $0x18] sm:$0xff] }
  0x4a   :  { %415 = vmatprep.subr.bf16.mxu1 %v783_v0  ;;  %362 = vmatprep.subr.bf16.mxu0 %v670_v16 }
  0x4d   :  { %416 = vmatpush1.bf16.msra.mxu1 %v672_v17  ;;  %363 = vmatpush1.bf16.msra.mxu0 %v673_v18  ;;  %v482_v17 = vld [vmem:[#allocation7 + $0x20] sm:$0xff] }
  0x4e   :  { %417 = vmatprep.subr.bf16.mxu1 %v783_v0  ;;  %364 = vmatprep.subr.bf16.mxu0 %v674_v19 }
  0x51   :  { %418 = vmatpush1.bf16.msra.mxu1 %v676_v20  ;;  %365 = vmatpush1.bf16.msra.mxu0 %v677_v21 }
  0x52   :  { %419 = vmatprep.subr.bf16.mxu1 %v783_v0  ;;  %366 = vmatprep.subr.bf16.mxu0 %v678_v22 }
  0x55   :  { %420 = vmatpush1.bf16.msra.mxu1 %v680_v23  ;;  %367 = vmatpush1.bf16.msra.mxu0 %v681_v24 }
  0x56   :  { %421 = vmatprep.subr.bf16.mxu1 %v783_v0  ;;  %368 = vmatprep.subr.bf16.mxu0 %v682_v25 }
  0x59   :  { %422 = vmatpush1.bf16.msra.mxu1 %v684_v27  ;;  %369 = vmatpush1.bf16.msra.mxu0 %v685_v28 }
  0x5a   :  { %423 = vmatprep.subr.bf16.mxu1 %v783_v0  ;;  %370 = vmatprep.subr.bf16.mxu0 %v686_v29 }
  0x5d   :  { %424 = vmatpush1.bf16.msra.mxu1 %v688_v30  ;;  %371 = vmatpush1.bf16.msra.mxu0 %v689_v31 }
  0x5e   :  { %425 = vmatprep.subr.bf16.mxu1 %v783_v0  ;;  %372 = vmatprep.subr.bf16.mxu0 %v690_v32 }
  0x61   :  { %426 = vmatpush1.bf16.msra.mxu1 %v692_v33  ;;  %373 = vmatpush1.bf16.msra.mxu0 %v693_v34 }
  0x62   :  { %427 = vmatprep.subr.bf16.mxu1 %v783_v0  ;;  %374 = vmatprep.subr.bf16.mxu0 %v694_v35 }
  0x65   :  { %428 = vmatpush1.bf16.msra.mxu1 %v696_v36  ;;  %375 = vmatpush1.bf16.msra.mxu0 %v697_v37 }
  0x68   :  { %438 = vmatmul.mubr.bf16.vlgmr.msra.gmra.mrb[0].mxu1 %v698_v38  ;;  %385 = vmatmul.mubr.bf16.vlgmr.msra.gmra.mrb[0].mxu0 %v698_v38 }
  0x69   :  { %639 = vmatprep.mubr.msk.bf16.mxu1 %vm345_vm0, %v701_v39  ;;  %637 = vmatprep.mubr.msk.bf16.mxu0 %vm345_vm0, %v701_v39 }
  0x70   :  { %446 = vmatmul.mubr.bf16.gmra.mrb[4].mxu1 %v703_v40  ;;  %395 = vmatmul.mubr.bf16.gmra.mrb[4].mxu0 %v703_v40 }
 0x13b   :  { %v439_v50 = vpop.f32.mrb[0].mxu1  ;;  %v386_v52 = vpop.f32.mrb[0].mxu0 }
 0x13c   :  { %v440_v51 = vadd.f32 %v439_v50, %v131_v47  ;;  %v441_v53 = vpop.f32.mrb[1].mxu1  ;;  %v387_v54 = vadd.f32 %v386_v52, %v123_v48  ;;  %v388_v55 = vpop.f32.mrb[1].mxu0 }
 0x13d   :  { %v442_v56 = vpop.f32.mrb[2].mxu1  ;;  %v389_v58 = vadd.f32 %v388_v55, %v885_v49  ;;  %v390_v60 = vpop.f32.mrb[2].mxu0 }
 0x13e   :  { %v456_v57 = vmul.f32 0.01, %v440_v51  ;;  %v443_v59 = vadd.f32 %v442_v56, %v131_v47  ;;  %v444_v61 = vpop.f32.mrb[3].mxu1  ;;  %v454_v63 = vmul.f32 0.01, %v387_v54  ;;  %v391_v0 = vadd.f32 %v390_v60, %v123_v48  ;;  %v392_v1 = vpop.f32.mrb[3].mxu0 }
 0x13f   :  { %v455_v3 = vmul.f32 0.01, %v389_v58  ;;  %v393_v5 = vadd.f32 %v392_v1, %v885_v49 }
 0x140   :  { %v468_v2 = vmax.f32 %v440_v51, %v456_v57  ;;  %v459_v4 = vmul.f32 0.01, %v443_v59  ;;  %v466_v6 = vmax.f32 %v387_v54, %v454_v63  ;;  %v457_v8 = vmul.f32 0.01, %v391_v0 }
 0x141   :  { %v467_v11 = vmax.f32 %v389_v58, %v455_v3  ;;  %v458_v15 = vmul.f32 0.01, %v393_v5 }
 0x142   :  { %v486_v9 = vadd.f32 %v480_v62, %v468_v2  ;;  %v471_v13 = vmax.f32 %v443_v59, %v459_v4  ;;  %v469_v16 = vmax.f32 %v391_v0, %v457_v8  ;;  %v484_v24 = vadd.f32 %v478_v10, %v466_v6 }
 0x143   :  { %v447_v18 = vpop.f32.mrb[4].mxu1  ;;  %v470_v20 = vmax.f32 %v393_v5, %v458_v15  ;;  %v396_v22 = vpop.f32.mrb[4].mxu0  ;;  %v485_v25 = vadd.f32 %v479_v12, %v467_v11 }
 0x144   :  { %v489_v19 = vadd.f32 %v483_v7, %v471_v13  ;;  %v448_v21 = vadd.f32 %v447_v18, %v131_v47  ;;  %v449_v23 = vpop.f32.mrb[5].mxu1  ;;  %v487_v26 = vadd.f32 %v481_v14, %v469_v16  ;;  %v397_v27 = vadd.f32 %v396_v22, %v123_v48  ;;  %v398_v28 = vpop.f32.mrb[5].mxu0 }
 0x145   :  { %v450_v29 = vpop.f32.mrb[6].mxu1  ;;  %v488_v31 = vadd.f32 %v482_v17, %v470_v20  ;;  %v399_v33 = vadd.f32 %v398_v28, %v885_v49  ;;  %v400_v34 = vpop.f32.mrb[6].mxu0 }
 0x146   :  { %v510_v30 = vmax.f32 %v486_v9, %v489_v19  ;;  %v462_v32 = vmul.f32 0.01, %v448_v21  ;;  %v452_v35 = vpop.f32.mrb[7].mxu1  ;;  %v496_v36 = vmax.f32 %v484_v24, %v487_v26  ;;  %v460_v37 = vmul.f32 0.01, %v397_v27  ;;  %v402_v40 = vpop.f32.mrb[7].mxu0 }
 0x147   :  { %v451_v38 = vadd.f32 %v450_v29, %v131_v47  ;;  %v401_v39 = vadd.f32 %v400_v34, %v123_v48  ;;  %v503_v44 = vmax.f32 %v485_v25, %v488_v31  ;;  %v461_v56 = vmul.f32 0.01, %v399_v33  ;;  %v538_v26 = vld [vmem:[%s910_s4] sm:$0x7] }
 0x148   :  { %v511_v41 = vrot.slane %v510_v30, 4  ;;  %v474_v50 = vmax.f32 %v448_v21, %v462_v32  ;;  %v497_v51 = vrot.slane %v496_v36, 4  ;;  %v472_v52 = vmax.f32 %v397_v27, %v460_v37 }
 0x149   :  { %v465_v53 = vmul.f32 0.01, %v451_v38  ;;  %v463_v54 = vmul.f32 0.01, %v401_v39  ;;  %v504_v61 = vrot.slane %v503_v44, 4  ;;  %v403_v63 = vadd.f32 %v402_v40, %v885_v49 }
 0x14a   :  { %v512_v55 = vmax.f32 %v510_v30, %v511_v41  ;;  %v498_v57 = vmax.f32 %v496_v36, %v497_v51  ;;  %v492_v58 = vadd.f32 %v480_v62, %v474_v50  ;;  %v490_v0 = vadd.f32 %v478_v10, %v472_v52 }
 0x14b   :  { %v477_v59 = vmax.f32 %v451_v38, %v465_v53  ;;  %v475_v60 = vmax.f32 %v401_v39, %v463_v54  ;;  %v473_v1 = vmax.f32 %v399_v33, %v461_v56  ;;  %v464_v2 = vmul.f32 0.01, %v403_v63 }
 0x14c   :  { %v513_v3 = vrot.slane %v512_v55, 2  ;;  %v499_v4 = vrot.slane %v498_v57, 2  ;;  %v505_v8 = vmax.f32 %v503_v44, %v504_v61  ;;  %v543_v30 = vrot.slane %v538_v26, %v122_v45 }
 0x14d   :  { %v495_v47 = vadd.f32 %v483_v7, %v477_v59  ;;  %v493_v48 = vadd.f32 %v481_v14, %v475_v60  ;;  %v476_v9 = vmax.f32 %v403_v63, %v464_v2  ;;  %v491_v15 = vadd.f32 %v479_v12, %v473_v1 }
 0x14e   :  { %v500_v16 = vmax.f32 %v498_v57, %v499_v4  ;;  %v514_v20 = vmax.f32 %v512_v55, %v513_v3  ;;  %v506_v49 = vrot.slane %v505_v8, 2  ;;  %v551_v31 = vrot.slane %v538_v26, %v130_v43 }
 0x14f   :  { %v531_v5 = vmax.f32 %v492_v58, %v495_v47  ;;  %v517_v6 = vmax.f32 %v490_v0, %v493_v48  ;;  %v494_v62 = vadd.f32 %v482_v17, %v476_v9  ;;  %v547_v45 = vrot.slane %v538_v26, %v126_v46 }
 0x150   :  { %v501_v24 = vrot.slane %v500_v16, 1  ;;  %v515_v25 = vrot.slane %v514_v20, 1  ;;  %v507_v27 = vmax.f32 %v505_v8, %v506_v49  ;;  %v586_v47 = vstv %s911_s5 }
 0x151   :  { %v532_v11 = vrot.slane %v531_v5, 4  ;;  %v518_v13 = vrot.slane %v517_v6, 4  ;;  %v524_v10 = vmax.f32 %v491_v15, %v494_v62 }
 0x152   :  { %v502_v32 = vmax.f32 %v500_v16, %v501_v24  ;;  %v516_v33 = vmax.f32 %v514_v20, %v515_v25  ;;  %v508_v37 = vrot.slane %v507_v27, 1 }
 0x153   :  { %v533_v18 = vmax.f32 %v531_v5, %v532_v11  ;;  %v519_v19 = vmax.f32 %v517_v6, %v518_v13  ;;  %v525_v21 = vrot.slane %v524_v10, 4 }
 0x154   :  { %v555_v41 = vmul.f32 %v543_v30, %v502_v32  ;;  %v557_v44 = vmul.f32 %v551_v31, %v516_v33  ;;  %v509_v52 = vmax.f32 %v507_v27, %v508_v37 }
 0x155   :  { %v534_v7 = vrot.slane %v533_v18, 2  ;;  %v520_v14 = vrot.slane %v519_v19, 2  ;;  %v526_v12 = vmax.f32 %v524_v10, %v525_v21 }
 0x156   :  { %v556_v56 = vmul.f32 %v547_v45, %v509_v52 }
 0x157   :  { %v535_v22 = vmax.f32 %v533_v18, %v534_v7  ;;  %v521_v23 = vmax.f32 %v519_v19, %v520_v14  ;;  %v527_v29 = vrot.slane %v526_v12, 2 }
 0x159   :  { %v522_v17 = vrot.slane %v521_v23, 1  ;;  %v536_v28 = vrot.slane %v535_v22, 1  ;;  %v528_v36 = vmax.f32 %v526_v12, %v527_v29 }
 0x15b   :  { %v523_v34 = vmax.f32 %v521_v23, %v522_v17  ;;  %v537_v35 = vmax.f32 %v535_v22, %v536_v28  ;;  %v529_v40 = vrot.slane %v528_v36, 1 }
 0x15d   :  { %v558_v38 = vmul.f32 %v543_v30, %v523_v34  ;;  %v560_v39 = vmul.f32 %v551_v31, %v537_v35  ;;  %v530_v53 = vmax.f32 %v528_v36, %v529_v40 }
 0x15f   :  { %v567_v50 = vrot.slane %v558_v38, 7  ;;  %v572_v51 = vrot.slane %v560_v39, 7  ;;  %v559_v55 = vmul.f32 %v547_v45, %v530_v53 }
 0x161   :  { %v569_v43 = vsel %vm568_vm1, %v567_v50, %v555_v41  ;;  %v573_v54 = vsel %vm568_vm1, %v572_v51, %v557_v44  ;;  %v570_v57 = vrot.slane %v559_v55, 7 }
 0x162   :  { %v578_v58 = vsel %vm577_vm2, %v569_v43, 0.0  ;;  %v581_v63 = vsel %vm577_vm2, %v573_v54, 0.0 }
 0x163   :  { %v571_v59 = vsel %vm568_vm1, %v570_v57, %v556_v56 }
 0x164   :  { %v579_v60 = vsel %vm577_vm2, %v571_v59, 0.0 }
 0x165   :  { %v580_v61 = vadd.f32 %v579_v60, %v578_v58 }
 0x167   :  { %v582_v0 = vadd.f32 %v581_v63, %v580_v61 }
 0x169   :  { %583 = vadd.xlane.f32.xlu0 %v582_v0 }
 0x1f6   :  { %v584_v48 = vpop.xlane.xlu0 %583 }
 0x1f7   :  { %v587_v42 = vadd.f32 %v586_v47, %v584_v48 }
 0x1f9   :  { %589 = vst.msk [vmem:[%s912_s6] sm:$0x3] %vm588_vm3, %v587_v42 }
 0x1fa   :  { %594 = vsyncpa [#allocation4], 1 }
 0x1fb   :  { %595 = vsyncpa [#allocation6], 1 }

</bundles_post_ra>
